<compile_context>
chip_gen: v7x
topology: tpu7x:2x2x1
jax: 0.10.0
libtpu: 0.0.40
codegen_flags: <defaults>
</compile_context>

<pallas_src>
import functools

import numpy as np
import jax
import jax.numpy as jnp
from jax.experimental import pallas as pl
from jax.experimental.pallas import tpu as pltpu

IGNORE_LABEL = 255


def _round_up(x, m):
    return ((x + m - 1) // m) * m


def _pick_k(n_sub, k_max):
    """Largest multiple of 8 that divides n_sub and is <= k_max (0 if none)."""
    best = 0
    k = 8
    lim = min(n_sub, k_max)
    while k <= lim:
        if n_sub % k == 0:
            best = k
        k += 8
    return best


# ---------------------------------------------------------------------------
# Kernel 1: softmax over classes + packed (-error | one-hot) sort key
# ---------------------------------------------------------------------------
def _softmax_err_kernel(logits_ref, tgt_ref, key_ref, *, ignore_label, hw, tile_p):
    x = logits_ref[0].astype(jnp.float32)          # (C, T) logits (cast in VMEM)
    t = tgt_ref[0]                                 # (1, T) int32 labels

    # softmax over the class (sublane) axis; reciprocal only on the (1, T) denom
    m = jnp.max(x, axis=0, keepdims=True)
    e = jnp.exp(x - m)
    p = e * (1.0 / jnp.sum(e, axis=0, keepdims=True))

    # mask the ragged H*W tail (no HBM pad of the logits) and ignored pixels
    lane = jax.lax.broadcasted_iota(jnp.int32, t.shape, 1)          # (1, T)
    in_bounds = (pl.program_id(1) * tile_p + lane) < hw
    valid = (t != ignore_label) & in_bounds                         # (1, T)

    cls = jax.lax.broadcasted_iota(jnp.int32, x.shape, 0)           # (C, T)
    is_cls = (t == cls) & valid                                     # (C, T)
    onehot = is_cls.astype(jnp.float32)
    # where() (not multiply) so NaN/Inf from tail-garbage logits cannot leak.
    nerr = jnp.where(valid, -jnp.abs(onehot - p), 0.0)

    # Pack the one-hot bit into the LSB of the f32 key (<= 1 ulp of err).
    # Invariant: masked/padded pixels carry key == +-0.0 with LSB 0, so after the
    # ascending sort they land behind every err > 0 pixel and contribute nothing.
    bits = jax.lax.bitcast_convert_type(nerr, jnp.int32)
    bits = (bits & jnp.int32(-2)) | is_cls.astype(jnp.int32)
    key_ref[...] = jax.lax.bitcast_convert_type(bits, jnp.float32)


# ---------------------------------------------------------------------------
# Kernel 2: blocked Lovasz prefix scan (K stacked sub-tiles per grid step)
# ---------------------------------------------------------------------------
def _lovasz_scan_kernel(gts_ref, key_ref, loss_ref, tri_ref, lowk_ref, cumt_ref,
                        *, k_sub, tile_s):
    c = pl.program_id(0)          # class (parallel)
    s = pl.program_id(1)          # scan step along this class's sorted pixels

    # Re-init constants / per-class state at every class's first step, so the
    # kernel stays correct when the class axis is sharded across TensorCores.
    @pl.when(s == 0)
    def _init():
        ii = jax.lax.broadcasted_iota(jnp.int32, (tile_s, tile_s), 0)
        jj = jax.lax.broadcasted_iota(jnp.int32, (tile_s, tile_s), 1)
        tri_ref[...] = (ii <= jj).astype(jnp.float32).astype(tri_ref.dtype)
        ki = jax.lax.broadcasted_iota(jnp.int32, (k_sub, k_sub), 0)
        kj = jax.lax.broadcasted_iota(jnp.int32, (k_sub, k_sub), 1)
        lowk_ref[...] = (kj < ki).astype(jnp.float32).astype(lowk_ref.dtype)
        cumt_ref[...] = jnp.zeros_like(cumt_ref)
        loss_ref[...] = jnp.zeros_like(loss_ref)

    # Unpack the sorted keys: LSB = one-hot target bit, remaining bits = -err.
    bits = jax.lax.bitcast_convert_type(key_ref[0], jnp.int32)       # (K, T)
    tgt = (bits & 1).astype(jnp.float32)                             # 0/1
    nerr = jax.lax.bitcast_convert_type(bits & jnp.int32(-2), jnp.float32)

    # This class's positive-pixel count, kept as a (1, 1) tile (no scalar moves).
    row = jax.lax.broadcasted_iota(jnp.int32, gts_ref.shape, 0)
    gts = jnp.sum(jnp.where(row == c, gts_ref[...], 0.0), axis=0, keepdims=True)

    # Global inclusive cumsum of the sorted 0/1 targets:
    #   within-row cumsum : (K, T) x (T, T) upper-triangular bf16 matmul (MXU)
    #   rows-above offset : strictly-lower (K, K) x (K, T) bf16 matmul + row sum
    #   previous blocks   : carried count in VMEM scratch
    # All matmul operands are 0/1 bf16 with f32 accumulation, so counts are exact.
    tgt_bf = tgt.astype(jnp.bfloat16)
    cum_local = jnp.dot(tgt_bf, tri_ref[...], preferred_element_type=jnp.float32)
    if k_sub > 1:
        above = jnp.dot(lowk_ref[...], tgt_bf, preferred_element_type=jnp.float32)
        offs = jnp.sum(above, axis=1, keepdims=True)                 # (K, 1)
    else:
        offs = jnp.zeros((k_sub, 1), jnp.float32)
    cum_t = cumt_ref[...] + offs + cum_local                         # (K, T)

    # 1-based global position of each element in this class's sorted stream.
    kk = jax.lax.broadcasted_iota(jnp.int32, (k_sub, tile_s), 0)
    jj = jax.lax.broadcasted_iota(jnp.int32, (k_sub, tile_s), 1)
    pos_i = s * (k_sub * tile_s) + kk * tile_s + jj                  # 0-based
    pos = (pos_i + 1).astype(jnp.float32)

    # lovasz_grad: jaccard[i] - jaccard[i-1] with jaccard = 1 - I/U,
    # I = gts - cumsum(t), U = gts + cumsum(1 - t).  The previous element's I/U
    # follow in closed form from (cum_t - t, pos - 1), so no lane shift is
    # needed and the two divisions fuse into one.
    inter = gts - cum_t
    union = gts + (pos - cum_t)                                      # >= 1
    inter_p = inter + tgt                                            # I[i-1]
    union_p = union - (1.0 - tgt)                                    # U[i-1]
    first = pos_i == 0                     # global first element: grad = jac[0]
    numer = jnp.where(first, pos, inter_p * union - inter * union_p)
    denom = jnp.where(first, union, union * union_p)
    grad = numer / denom

    # err = -nerr, so sum(err * grad) = -sum(nerr * grad); accumulate per class.
    loss_ref[...] = loss_ref[...] - jnp.sum(nerr * grad, keepdims=True)

    # carry this class's positive count into the next step
    cumt_ref[...] = cumt_ref[...] + jnp.sum(tgt, keepdims=True)


# ---------------------------------------------------------------------------
# Wrapper
# ---------------------------------------------------------------------------
def lovasz_softmax(logits, targets, *, ignore_label=IGNORE_LABEL,
                   reduction="mean", tile_p=8192, tile_s=512, scan_rows=512):
    N, C, H, W = logits.shape
    HW = H * W

    tile_p = _round_up(min(tile_p, _round_up(HW, 128)), 128)
    HW_pad = _round_up(HW, tile_p)
    n_tiles = HW_pad // tile_p
    P_total = N * HW_pad      # padded columns carry err=0 / tgt=0 -> inert

    # NCHW -> (N, C, HW): pure reshape (no HBM transpose, no dtype cast).
    x = logits.reshape(N, C, HW)
    t = targets.reshape(N, 1, HW).astype(jnp.int32)

    kern1 = functools.partial(_softmax_err_kernel, ignore_label=ignore_label,
                              hw=HW, tile_p=tile_p)
    keys = pl.pallas_call(
        kern1,
        out_shape=jax.ShapeDtypeStruct((C, P_total), jnp.float32),
        grid=(N, n_tiles),
        in_specs=[pl.BlockSpec((1, C, tile_p), lambda n, i: (n, 0, i)),
                  pl.BlockSpec((1, 1, tile_p), lambda n, i: (n, 0, i))],
        out_specs=pl.BlockSpec((C, tile_p), lambda n, i: (0, n * n_tiles + i)),
        compiler_params=pltpu.CompilerParams(
            dimension_semantics=("parallel", "parallel"),
            vmem_limit_bytes=32 * 1024 * 1024),
    )(x, t)

    # Per-class valid-pixel counts: one fused compare+reduce pass over the small
    # integer targets (folding this into kernel 1 would need an accumulator
    # across its parallel axes or narrow masked stores, so it stays here).
    t_flat = targets.reshape(-1).astype(jnp.int32)
    cls_ids = jnp.arange(C, dtype=jnp.int32)
    valid_flat = (t_flat != ignore_label)[None, :]
    gts = jnp.sum(((t_flat[None, :] == cls_ids[:, None]) & valid_flat)
                  .astype(jnp.float32), axis=1, keepdims=True)          # (C, 1)

    # TODO(synk): a per-class descending sort has no clean in-kernel Pallas/TPU
    # equivalent; use one fused single-operand lax.sort on the packed keys.
    keys_sorted = jax.lax.sort(keys, dimension=-1, is_stable=False)

    # --- kernel-2 blocking: tile_s lanes per sub-tile, k_sub sub-tiles per step
    ts = max(128, min(512, int(tile_s)))
    ts = 1 << (ts.bit_length() - 1)              # power of two in [128, 512]
    while ts > 128 and P_total % ts != 0:
        ts //= 2                                 # P_total % 128 == 0 always
    n_sub = P_total // ts

    k_sub = _pick_k(n_sub, max(8, scan_rows))
    pad_cols = 0
    if k_sub == 0:
        if n_sub <= max(8, scan_rows):
            k_sub = n_sub                        # tiny problem: one block/class
        else:
            # rare ragged case: append inert zero keys so the per-class sub-tile
            # count becomes a multiple of 8 (zero keys sit at the sorted tail).
            n_sub_p = _round_up(n_sub, 8)
            pad_cols = (n_sub_p - n_sub) * ts
            n_sub = n_sub_p
            k_sub = _pick_k(n_sub, max(8, scan_rows))
    if pad_cols:
        keys_sorted = jnp.pad(keys_sorted, ((0, 0), (0, pad_cols)))
    n_steps = n_sub // k_sub

    keys3 = keys_sorted.reshape(C, n_sub, ts)    # free row-major reshape

    # TODO(synk): on v7x, classes could additionally be grouped so each core gets
    # a contiguous class range; the "parallel" class axis already lets megacore
    # shard kernel 2 across both TensorCores.
    kern2 = functools.partial(_lovasz_scan_kernel, k_sub=k_sub, tile_s=ts)
    out2 = pl.pallas_call(
        kern2,
        out_shape=jax.ShapeDtypeStruct((C, 1, 128), jnp.float32),
        grid=(C, n_steps),
        in_specs=[pl.BlockSpec((C, 1), lambda c, s: (0, 0)),
                  pl.BlockSpec((1, k_sub, ts), lambda c, s: (c, s, 0))],
        out_specs=pl.BlockSpec((1, 1, 128), lambda c, s: (c, 0, 0)),
        scratch_shapes=[pltpu.VMEM((ts, ts), jnp.bfloat16),      # incl. upper tri
                        pltpu.VMEM((k_sub, k_sub), jnp.bfloat16),  # strict lower
                        pltpu.VMEM((1, 1), jnp.float32)],          # carried count
        compiler_params=pltpu.CompilerParams(
            dimension_semantics=("parallel", "arbitrary"),
            vmem_limit_bytes=32 * 1024 * 1024),
    )(gts, keys3)
    losses = out2[:, 0, 0]

    if reduction == "none":
        return losses
    if reduction == "sum":
        return jnp.sum(losses)
    return jnp.mean(losses)


# ---------------------------------------------------------------------------
# Pure-numpy reference mirroring the PyTorch module (sanity check)
# ---------------------------------------------------------------------------
def _reference(logits, targets, ignore=IGNORE_LABEL):
    logits = np.asarray(logits, np.float32)
    targets = np.asarray(targets)
    N, C, H, W = logits.shape
    x = logits.transpose(0, 2, 3, 1).reshape(-1, C)
    x = x - x.max(axis=1, keepdims=True)
    p = np.exp(x)
    p /= p.sum(axis=1, keepdims=True)
    t = targets.reshape(-1)
    mask = t != ignore
    p = p[mask]
    t = t[mask]
    losses = []
    for c in range(C):
        tc = (t == c).astype(np.float32)
        err = np.abs(tc - p[:, c])
        order = np.argsort(-err, kind="stable")
        err_s = err[order]
        tc_s = tc[order]
        gts = tc_s.sum()
        inter = gts - np.cumsum(tc_s)
        union = gts + np.cumsum(1.0 - tc_s)
        jac = 1.0 - inter / union
        if len(tc_s) > 1:
            jac[1:] = jac[1:] - jac[:-1]
        losses.append(float(np.dot(err_s, jac)))
    return float(np.mean(losses))


if __name__ == "__main__":
    key = jax.random.PRNGKey(0)
    k1, k2, k3 = jax.random.split(key, 3)
    N, C, H, W = 2, 4, 16, 16
    logits = jax.random.normal(k1, (N, C, H, W), dtype=jnp.float32)
    targets = jax.random.randint(k2, (N, H, W), 0, C, dtype=jnp.int32)
    # sprinkle a few ignore-label pixels to exercise the masking path
    ignore_mask = jax.random.uniform(k3, (N, H, W)) < 0.1
    targets = jnp.where(ignore_mask, IGNORE_LABEL, targets)

    loss = jax.block_until_ready(lovasz_softmax(logits, targets))

    ref = _reference(logits, targets)
    assert np.isfinite(float(loss))
    # tolerance covers f32 rounding, sort tie order and the <=1 ulp key packing
    assert abs(float(loss) - ref) < 5e-3, (float(loss), ref)
    print("KERNEL_OK")
</pallas_src>

<mosaic_0001>
module attributes {stable_mosaic.version = 11 : i64} {
  func.func @_softmax_err_kernel(%arg0: i32, %arg1: i32, %arg2: memref<1x4x256xf32, #tpu.memory_space<vmem>>, %arg3: memref<1x1x256xi32, #tpu.memory_space<vmem>>, %arg4: memref<4x256xf32, #tpu.memory_space<vmem>>) attributes {dimension_semantics = [#tpu.dimension_semantics<parallel>, #tpu.dimension_semantics<parallel>], iteration_bounds = array<i64: 2, 1>, scalar_prefetch = 0 : i64, scratch_operands = 0 : i64, tpu.core_type = #tpu.core_type<tc>, window_params = [{transform_indices = @transform_0, window_bounds = array<i64: 1, 4, 256>}, {transform_indices = @transform_1, window_bounds = array<i64: 1, 1, 256>}, {transform_indices = @transform_2, window_bounds = array<i64: 4, 256>}]} {
    %c0 = arith.constant 0 : index
    %c0_0 = arith.constant 0 : index
    %c0_1 = arith.constant 0 : index
    %0 = vector.load %arg2[%c0, %c0_0, %c0_1] : memref<1x4x256xf32, #tpu.memory_space<vmem>>, vector<1x4x256xf32>
    %1 = vector.shape_cast %0 : vector<1x4x256xf32> to vector<4x256xf32>
    %c0_2 = arith.constant 0 : index
    %c0_3 = arith.constant 0 : index
    %c0_4 = arith.constant 0 : index
    %2 = vector.load %arg3[%c0_2, %c0_3, %c0_4] : memref<1x1x256xi32, #tpu.memory_space<vmem>>, vector<1x1x256xi32>
    %3 = vector.shape_cast %2 : vector<1x1x256xi32> to vector<1x256xi32>
    %cst = arith.constant dense<0xFF800000> : vector<256xf32>
    %4 = vector.multi_reduction <maximumf>, %1, %cst [0] : vector<4x256xf32> to vector<256xf32>
    %5 = vector.shape_cast %4 : vector<256xf32> to vector<1x256xf32>
    %6 = vector.broadcast %5 : vector<1x256xf32> to vector<4x256xf32>
    %7 = arith.subf %1, %6 : vector<4x256xf32>
    %8 = math.exp %7 : vector<4x256xf32>
    %cst_5 = arith.constant dense<0.000000e+00> : vector<256xf32>
    %9 = vector.multi_reduction <add>, %8, %cst_5 [0] : vector<4x256xf32> to vector<256xf32>
    %10 = vector.shape_cast %9 : vector<256xf32> to vector<1x256xf32>
    %cst_6 = arith.constant 1.000000e+00 : f32
    %11 = vector.broadcast %cst_6 : f32 to vector<1x256xf32>
    %12 = arith.divf %11, %10 : vector<1x256xf32>
    %13 = vector.broadcast %12 : vector<1x256xf32> to vector<4x256xf32>
    %14 = arith.mulf %8, %13 : vector<4x256xf32>
    %15 = tpu.iota {dimensions = array<i32: 1>} : vector<1x256xi32>
    %c256_i32 = arith.constant 256 : i32
    %16 = arith.muli %arg1, %c256_i32 : i32
    %17 = vector.broadcast %16 : i32 to vector<1x256xi32>
    %18 = arith.addi %17, %15 : vector<1x256xi32>
    %c256_i32_7 = arith.constant 256 : i32
    %19 = vector.broadcast %c256_i32_7 : i32 to vector<1x256xi32>
    %20 = arith.cmpi slt, %18, %19 : vector<1x256xi32>
    %c255_i32 = arith.constant 255 : i32
    %21 = vector.broadcast %c255_i32 : i32 to vector<1x256xi32>
    %22 = arith.cmpi ne, %3, %21 : vector<1x256xi32>
    %23 = arith.andi %22, %20 : vector<1x256xi1>
    %24 = tpu.iota {dimensions = array<i32: 0>} : vector<4x256xi32>
    %25 = vector.broadcast %3 : vector<1x256xi32> to vector<4x256xi32>
    %26 = arith.cmpi eq, %25, %24 : vector<4x256xi32>
    %27 = vector.broadcast %23 : vector<1x256xi1> to vector<4x256xi1>
    %28 = arith.andi %26, %27 : vector<4x256xi1>
    %29 = arith.extui %28 : vector<4x256xi1> to vector<4x256xi32>
    %30 = arith.sitofp %29 : vector<4x256xi32> to vector<4x256xf32>
    %31 = arith.subf %30, %14 : vector<4x256xf32>
    %32 = math.absf %31 : vector<4x256xf32>
    %cst_8 = arith.constant 0.000000e+00 : f32
    %33 = vector.broadcast %cst_8 : f32 to vector<4x256xf32>
    %34 = arith.subf %33, %32 : vector<4x256xf32>
    %cst_9 = arith.constant 0.000000e+00 : f32
    %35 = vector.shape_cast %23 : vector<1x256xi1> to vector<1x256xi1>
    %36 = vector.broadcast %35 : vector<1x256xi1> to vector<4x256xi1>
    %37 = vector.broadcast %cst_9 : f32 to vector<4x256xf32>
    %38 = arith.select %36, %34, %37 : vector<4x256xi1>, vector<4x256xf32>
    %39 = tpu.bitcast %38 : vector<4x256xf32> -> vector<4x256xi32>
    %c-2_i32 = arith.constant -2 : i32
    %40 = vector.broadcast %c-2_i32 : i32 to vector<4x256xi32>
    %41 = arith.andi %39, %40 : vector<4x256xi32>
    %42 = arith.extui %28 : vector<4x256xi1> to vector<4x256xi32>
    %43 = arith.ori %41, %42 : vector<4x256xi32>
    %44 = tpu.bitcast %43 : vector<4x256xi32> -> vector<4x256xf32>
    %c0_10 = arith.constant 0 : index
    %c0_11 = arith.constant 0 : index
    %45 = vector.load %arg4[%c0_10, %c0_11] : memref<4x256xf32, #tpu.memory_space<vmem>>, vector<4x256xf32>
    tpu.vector_store %arg4[%c0_10, %c0_11], %44 {strides = array<i32>} : memref<4x256xf32, #tpu.memory_space<vmem>>, vector<4x256xf32>,
    return
  }
  func.func @transform_0(%arg0: i32, %arg1: i32) -> (i32, i32, i32) {
    %c0_i32 = arith.constant 0 : i32
    %c0_i32_0 = arith.constant 0 : i32
    return %arg0, %c0_i32, %arg1 : i32, i32, i32
  }
  func.func @transform_1(%arg0: i32, %arg1: i32) -> (i32, i32, i32) {
    %c0_i32 = arith.constant 0 : i32
    %c0_i32_0 = arith.constant 0 : i32
    return %arg0, %c0_i32, %arg1 : i32, i32, i32
  }
  func.func @transform_2(%arg0: i32, %arg1: i32) -> (i32, i32) {
    %c1_i32 = arith.constant 1 : i32
    %0 = arith.muli %arg0, %c1_i32 : i32
    %1 = arith.addi %0, %arg1 : i32
    %c0_i32 = arith.constant 0 : i32
    %c0_i32_0 = arith.constant 0 : i32
    return %c0_i32, %1 : i32, i32
  }
}

</mosaic_0001>

<bundles_post_ra>
// kernel: tpu_custom_call.1
= control target key start
LH: loop header
LB: loop body
LE: loop exit
PB: predicated region body
PF: predicated region fallthrough
CT: control target
= control target key end

     0   :  { %7 = vsyncpa [#allocation3], 0  ;;  %s981_s0 = inlined_call_operand.hbm [shape: f32[2,4,256], index: 0, kind: input, shape index: {}]   ;;  %s982_s1 = inlined_call_operand.hbm [shape: s32[2,1,256], index: 1, kind: input, shape index: {}]   ;;  %s983_s2 = inlined_call_operand.hbm [shape: f32[4,512], index: 2, kind: output, shape index: {}]  }
   0x1   :  { %9 = vsyncpa [#allocation3 + $0x1], 0 }
   0x2   :  { %10 = vsyncpa [#allocation6], 0 }
   0x3   :  { %12 = vsyncpa [#allocation6 + $0x1], 0 }
   0x4   :  { %13 = vsyncpa [#allocation4], 0 }
   0x5   :  { %15 = vsyncpa [#allocation4 + $0x1], 0  ;;  %s751_s9 = smov 0   ;;  %s753_s10 = smov 0  }
   0x6   :  { %s755_s11 = smov 0   ;;  %s757_s12 = smov 0  }
   0x7   :  { %s759_s13 = smov 0   ;;  %s761_s14 = smov 0  }
   0x8 LB: > { %s479_s15 = sadd.s32 4294967295, %s727_s14   ;;  %s480_s16 = sadd.s32 4294967294, %s727_s14   ;;  %s727_s14 = sphi %s761_s14, %s21_s14   ;;  %s723_s13 = sphi %s759_s13, %s1003_s13   ;;  %s719_s12 = sphi %s757_s12, %s1002_s12   ;;  %s715_s11 = sphi %s755_s11, %s1001_s11   ;;  %s711_s10 = sphi %s753_s10, %s1000_s10   ;;  %s707_s9 = sphi %s751_s9, %s999_s9  }
   0x9   : > { %s33_s17 = sadd.s32 1, %s723_s13  ;;  %s42_s18 = sadd.s32 1, %s715_s11 }
   0xa   : > { %p35_p0 = scmp.ge.s32.totalorder %s33_s17, 2  ;;  %p49_p1 = scmp.ne.s32.totalorder %s715_s11, %s711_s10 }
   0xb   : > { %p50_p2 = scmp.eq.s32.totalorder %s727_s14, 0  ;;  %p55_p3 = scmp.ne.s32.totalorder %s711_s10, %s707_s9 }
   0xc   : > { %s1005_s17 = smov (%p35_p0, %s33_s17), 0  ;;  %p56_p5 = scmp.eq.s32.totalorder %s479_s15, 0 }
   0xd   : > { %p792_p4 = por %p50_p2, %p49_p1  ;;  %s37_s20 = ssub.s32 %s723_s13, %s1005_s17 }
   0xe   : > { %p109_p6 = scmp.eq.s32.totalorder %s479_s15, 1  ;;  %p40_p7 = scmp.eq.s32.totalorder %s37_s20, 0 }
   0xf   : > { %p798_p8 = por %p56_p5, %p55_p3  ;;  %p115_p10 = scmp.eq.s32.totalorder %s480_s16, 1 }
  0x10   : > { %p802_p9 = por %p109_p6, %p49_p1  ;;  %p520_p13 = scmp.lt.s32.totalorder %s727_s14, 2 }
  0x11   : > { %s987_s21 = scalar_select %p798_p8, 1, 0 }
  0x12   : > { %s988_s22 = scalar_select %p802_p9, 1, 0 }
  0x13   : > { %s807_s23 = scalar_select %p40_p7, %s715_s11, %s42_s18  }
  0x14   : > { %p809_p11 = por %p115_p10, %p55_p3  ;;  %s816_s25 = sand.u32 1, %s715_s11  }
  0x15   : > { %s483_s26 = sshll.u32 %s816_s25, 3  ;;  %s500_s27 = sshll.u32 %s723_s13, 7 }
  0x16   : > { %s989_s24 = scalar_select %p809_p11, 1, 0 }
  0x17   : > { %s823_s30 = scalar_lea.hbm %s981_s0, %s500_s27  ;;  %s139_s3 = scalar_lea.vmem [#allocation2], %s483_s26 }
  0x18   : > { %s149_s4 = sshll.u32 %s139_s3, 4  ;;  %p829_p0 = pnand %p520_p13, %p792_p4  ;;  %s825_s4 = int_to_ptr.vmem [resolvable:$true] %s149_s4 }
  0x19   : > { %s136_s6 = scalar_lea.sflag [#allocation3], %s816_s25  ;;  %s581_s7 = scalar_lea.hbm %s823_s30, 128 }
  0x1a   : > { %p582_p3 = scmp.ne.s32.totalorder %s823_s30, %s581_s7  ;;  %p583_p5 = pneg %p829_p0 }
  0x1b   : > { %s586_s16 = scalar_lea.hbm %s981_s0, 256  ;;  %p587_p4 = scmp.lt.u32.totalorder %s823_s30, %s981_s0 }
  0x1c   : > { %p584_p6 = pnand %p583_p5, %p582_p3  ;;  %p588_p10 = scmp.lt.u32.totalorder %s586_s16, %s581_s7 }
  0x1d   : > { %p590_p12 = scmp.lt.u32.totalorder %s581_s7, %s823_s30 }
  0x1e   : > { %p585_p7 = pneg %p584_p6  ;;  %p589_p13 = por %p588_p10, %p587_p4 }
  0x20   : > { %p591_p1 = por %p590_p12, %p589_p13 }
  0x22   : > { %p592_p2 = pnand %p591_p1, %p585_p7 }
  0x24   : > { %595 = shalt.err (!%p592_p2)
}
  0x25   : > { %s596_s20 = scalar_lea.vmem %s825_s4, 128  ;;  %s729_s26 = smov [#allocation2]  }
  0x26   : > { %p597_p3 = scmp.ne.s32.totalorder %s825_s4, %s596_s20  ;;  %s601_s27 = sshll.u32 %s729_s26, 4  ;;  %s602_s27 = int_to_ptr.vmem [resolvable:$false] %s601_s27 }
  0x27   : > { %s603_s28 = scalar_lea.vmem %s602_s27, 256  ;;  %p604_p9 = scmp.lt.s32.totalorder %s825_s4, %s602_s27 }
  0x28   : > { %p599_p6 = pnand %p597_p3, %p583_p5  ;;  %p605_p4 = scmp.lt.s32.totalorder %s603_s28, %s596_s20 }
  0x2a   : > { %p600_p11 = pneg %p599_p6  ;;  %p606_p10 = por %p605_p4, %p604_p9 }
  0x2c   : > { %p607_p12 = pnand %p606_p10, %p600_p11 }
  0x2e   : > { %610 = shalt.err (!%p607_p12)
}
  0x2f   : > { %512 = dma.hbm_to_vmem [thread:$0]  (!%p829_p0), %s823_s30, 128, %s825_s4, %s136_s6  }
  0x30   : > { %p991_p1 = scmp.lt.s32.totalorder %s727_s14, 3  ;;  %p992_p2 = scmp.ge.s32.totalorder %s727_s14, 1 }
  0x31   : > { %s486_s3 = sshll.u32 %s816_s25, 1  ;;  %s501_s7 = sshll.u32 %s723_s13, 5 }
  0x32   : > { %p865_p7 = pnand %p992_p2, %p991_p1  ;;  %s874_s16 = scalar_lea.hbm %s982_s1, %s501_s7 }
  0x33   : > { %s160_s18 = scalar_lea.vmem [#allocation5], %s486_s3  ;;  %s157_s30 = scalar_lea.sflag [#allocation6], %s816_s25 }
  0x34   : > { %s993_s29 = scalar_select %p865_p7, 1, 0 }
  0x35   : > { %s170_s19 = sshll.u32 %s160_s18, 4  ;;  %s611_s4 = scalar_lea.hbm %s874_s16, 32  ;;  %s171_s19 = int_to_ptr.vmem [resolvable:$true] %s170_s19 }
  0x36   : > { %p612_p9 = scmp.ne.s32.totalorder %s874_s16, %s611_s4  ;;  %s616_s26 = scalar_lea.hbm %s982_s1, 64 }
  0x37   : > { %p617_p3 = scmp.lt.u32.totalorder %s874_s16, %s982_s1  ;;  %p618_p6 = scmp.lt.u32.totalorder %s616_s26, %s611_s4 }
  0x38   : > { %p614_p11 = pnand %p612_p9, %p583_p5  ;;  %p620_p10 = scmp.lt.u32.totalorder %s611_s4, %s874_s16 }
  0x39   : > { %p619_p4 = por %p618_p6, %p617_p3 }
  0x3a   : > { %p615_p13 = pneg %p614_p11 }
  0x3b   : > { %p621_p12 = por %p620_p10, %p619_p4 }
  0x3d   : > { %p622_p1 = pnand %p621_p12, %p615_p13 }
  0x3f   : > { %625 = shalt.err (!%p622_p1)
}
  0x40   : > { %s626_s25 = scalar_lea.vmem %s171_s19, 32  ;;  %s730_s3 = smov [#allocation5]  }
  0x41   : > { %p627_p2 = scmp.ne.s32.totalorder %s171_s19, %s626_s25  ;;  %s631_s7 = sshll.u32 %s730_s3, 4  ;;  %s632_s7 = int_to_ptr.vmem [resolvable:$false] %s631_s7 }
  0x42   : > { %s633_s8 = scalar_lea.vmem %s632_s7, 64  ;;  %p634_p8 = scmp.lt.s32.totalorder %s171_s19, %s632_s7 }
  0x43   : > { %p629_p9 = pnand %p627_p2, %p583_p5  ;;  %p635_p7 = scmp.lt.s32.totalorder %s633_s8, %s626_s25 }
  0x45   : > { %p630_p11 = pneg %p629_p9  ;;  %p636_p3 = por %p635_p7, %p634_p8 }
  0x47   : > { %p637_p6 = pnand %p636_p3, %p630_p11 }
  0x49   : > { %640 = shalt.err (!%p637_p6)
}
  0x4a   : > { %515 = dma.hbm_to_vmem [thread:$0]  (!%p829_p0), %s874_s16, 32, %s171_s19, %s157_s30  }
  0x4b   : > { %p994_p13 = scmp.ne.s32.totalorder %s993_s29, 0 }
  0x4c   : > { %s899_s15 = sand.u32 (!%p994_p13), 1, %s711_s10   ;;  %p995_p8 = scmp.ne.s32.totalorder (!%p994_p13), %s987_s21, 0 }
  0x4d   : > { %179 = sbr.rel (%p994_p13) target bundleno = 180 (0xb4), region = 28  ;;  %s490_s18 = sshll.u32 (!%p994_p13), %s899_s15, 3 }
  0x4e   : > { %s182_s4 = scalar_lea.sflag (!%p994_p13), [#allocation3], %s899_s15  ;;  %s185_s6 = scalar_lea.vmem (!%p994_p13), [#allocation2], %s490_s18 }
  0x54   : > { %694 = dma.done.wait (%p995_p8), %s182_s4, 128  }
  0x55   : > { %696 = vsyncadd (%p995_p8), %s182_s4, 4294967168  ;;  %s491_s5 = sshll.u32 %s899_s15, 1  ;;  %s191_s29 = scalar_lea.sflag [#allocation6], %s899_s15 }
  0x56   : > { %s911_s16 = scalar_lea.vmem [#allocation5], %s491_s5 }
  0x57   : > { %698 = dma.done.wait (%p995_p8), %s191_s29, 32  }
  0x58   : > { %700 = vsyncadd (%p995_p8), %s191_s29, 4294967264  ;;  %vm229_vm0 = vcmask 1043456   ;;  %v224_v0 = vld [vmem:[%s185_s6] sm:$0xff]  ;;  %v731_v19 = vmov 1966171168   ;;  %v293_v21 = vlaneseq  ;;  %v732_v24 = vmov 1  }
  0x59   : > { %v227_v1 = vcombine.high %v224_v0, %v224_v0  ;;  %v230_v2 = vsel %vm229_vm0, %v224_v0, -inf  ;;  %v291_v20 = vunpack.c.l.s4 %v731_v19  ;;  %v289_v25 = vcombine.low %v732_v24, %v732_v24  ;;  %v225_v36 = vld [vmem:[%s911_s16] sm:$0x3]  ;;  %s219_s21 = scalar_lea.vmem [#allocation7], %s490_s18  ;;  %s502_s30 = sshll.u32 %s719_s12, 7 }
  0x5a   : > { %v231_v3 = vrot.slane %v230_v2, 4  ;;  %v294_v23 = vshrl.u32 %v293_v21, 7  ;;  %vm286_vm1 = vcmp.ne.s32.totalorder %v225_v36, 255  ;;  %v733_v47 = vmov 0   ;;  %s371_s19 = sshll.u32 %s219_s21, 4  ;;  %s934_s27 = scalar_lea.hbm %s983_s2, %s502_s30  ;;  %s929_s19 = int_to_ptr.vmem [resolvable:$true] %s371_s19 }
  0x5b   : > { %v237_v4 = vsel %vm229_vm0, %v227_v1, -inf  ;;  %v292_v22 = vunpack.c.0.s8 %v291_v20  ;;  %v734_v57 = vmov 0.0   ;;  %s356_s28 = scalar_lea.sflag [#allocation4], %s899_s15  ;;  %s641_s25 = scalar_lea.vmem %s929_s19, 128 }
  0x5c   : > { %v232_v5 = vmax.f32 %v230_v2, %v231_v3  ;;  %v238_v6 = vrot.slane %v237_v4, 4  ;;  %v310_v46 = vsub.s32 0, %v294_v23  ;;  %v314_v49 = vsub.s32 1, %v294_v23  ;;  %p642_p0 = scmp.ne.s32.totalorder %s929_s19, %s641_s25  ;;  %p996_p5 = scmp.ne.s32.totalorder %s988_s22, 0 }
  0x5d   : > { %v295_v26 = vsub.s32 %v292_v22, %v294_v23  ;;  %s735_s12 = smov [#allocation7]  }
  0x5e   : > { %v233_v7 = vrot.slane %v232_v5, 2  ;;  %v239_v8 = vmax.f32 %v237_v4, %v238_v6  ;;  %v311_v50 = vrot.slane %v225_v36, %v310_v46  ;;  %v315_v52 = vrot.slane %v225_v36, %v314_v49  ;;  %p643_p7 = pnand %p642_p0, %p996_p5  ;;  %s645_s3 = sshll.u32 %s735_s12, 4  ;;  %s646_s3 = int_to_ptr.vmem [resolvable:$false] %s645_s3 }
  0x5f   : > { %v296_v30 = vrot.slane %v289_v25, %v295_v26  ;;  %s647_s7 = scalar_lea.vmem %s646_s3, 256  ;;  %p648_p10 = scmp.lt.s32.totalorder %s929_s19, %s646_s3 }
  0x60   : > { %v234_v9 = vmax.f32 %v232_v5, %v233_v7  ;;  %v240_v10 = vrot.slane %v239_v8, 2  ;;  %vm316_vm4 = vcmp.eq.s32.totalorder %v311_v50, %v294_v23  ;;  %vm317_vm6 = vcmp.eq.s32.totalorder %v315_v52, %v294_v23  ;;  %p644_p4 = pneg %p643_p7  ;;  %p649_p12 = scmp.lt.s32.totalorder %s647_s7, %s641_s25 }
  0x61   : > { %v303_v35 = vrot.slane %v296_v30, %v295_v26 }
  0x62   : > { %v235_v11 = vrot.slane %v234_v9, 1  ;;  %v241_v12 = vmax.f32 %v239_v8, %v240_v10  ;;  %p650_p1 = por %p649_p12, %p648_p10 }
  0x63   : > { %vm304_vm2 = vcmp.ne.s32.totalorder %v303_v35, 0 }
  0x64   : > { %v236_v13 = vmax.f32 %v234_v9, %v235_v11  ;;  %v242_v14 = vrot.slane %v241_v12, 1  ;;  %vm305_vm3 = vmand %vm286_vm1, %vm304_vm2  ;;  %p651_p2 = pnand %p650_p1, %p644_p4 }
  0x65   : > { %v318_v48 = vsel %vm305_vm3, 1, %v733_v47 }
  0x66   : > { %v243_v15 = vmax.f32 %v241_v12, %v242_v14  ;;  %v322_v51 = vrot.slane %v318_v48, %v310_v46  ;;  %v326_v53 = vrot.slane %v318_v48, %v314_v49 }
  0x68   : > { %v246_v16 = vcombine.low %v236_v13, %v243_v15  ;;  %vm327_vm5 = vcmp.eq.s32.totalorder %v322_v51, 1  ;;  %vm328_vm7 = vcmp.eq.s32.totalorder %v326_v53, 1 }
  0x69   : > { %vm329_vm8 = vmand %vm316_vm4, %vm327_vm5 }
  0x6a   : > { %v248_v17 = vsub.f32 %v224_v0, %v246_v16  ;;  %vm330_vm9 = vmand %vm317_vm6, %vm328_vm7  ;;  %v493_v58 = vsel %vm329_vm8, 1.0, %v734_v57  ;;  %v331_v3 = vsel %vm329_vm8, 1, %v733_v47 }
  0x6b   : > { %v494_v60 = vsel %vm330_vm9, 1.0, %v734_v57  ;;  %v332_v7 = vsel %vm330_vm9, 1, %v733_v47 }
  0x6c   : > { %v249_v18 = vmul.f32 1.442695, %v248_v17 }
  0x6e   : > { %575 = vpow2.f32 %v249_v18 }
  0x78   : > { %v576_v27 = vpop.eup %575 }
  0x79   : > { %v252_v28 = vcombine.high %v576_v27, %v576_v27  ;;  %v254_v29 = vsel %vm229_vm0, %v576_v27, 0.0 }
  0x7a   : > { %v255_v31 = vrot.slane %v254_v29, 4 }
  0x7b   : > { %v261_v32 = vsel %vm229_vm0, %v252_v28, 0.0 }
  0x7c   : > { %v256_v33 = vadd.f32 %v255_v31, %v254_v29  ;;  %v262_v34 = vrot.slane %v261_v32, 4 }
  0x7e   : > { %v257_v37 = vrot.slane %v256_v33, 2  ;;  %v263_v38 = vadd.f32 %v262_v34, %v261_v32 }
  0x80   : > { %v258_v39 = vadd.f32 %v257_v37, %v256_v33  ;;  %v264_v40 = vrot.slane %v263_v38, 2 }
  0x82   : > { %v259_v41 = vrot.slane %v258_v39, 1  ;;  %v265_v42 = vadd.f32 %v264_v40, %v263_v38 }
  0x84   : > { %v260_v43 = vadd.f32 %v259_v41, %v258_v39  ;;  %v266_v44 = vrot.slane %v265_v42, 1 }
  0x86   : > { %v267_v45 = vadd.f32 %v266_v44, %v265_v42  ;;  %577 = vrcp.f32 %v260_v43 }
  0x88   : > { %579 = vrcp.f32 %v267_v45 }
  0x90   : > { %v578_v54 = vpop.eup %577 }
  0x92   : > { %v580_v55 = vpop.eup %579 }
  0x93   : > { %v274_v56 = vcombine.low %v578_v54, %v580_v55 }
  0x95   : > { %v276_v59 = vmul.f32 %v576_v27, %v274_v56 }
  0x97   : > { %v336_v61 = vcombine.high %v276_v59, %v276_v59  ;;  %v338_v62 = vsub.f32 %v493_v58, %v276_v59 }
  0x99   : > { %v339_v63 = vsub.f32 %v494_v60, %v336_v61  ;;  %v340_v0 = vand.u32 2147483647, %v338_v62 }
  0x9b   : > { %v341_v1 = vand.u32 2147483647, %v339_v63  ;;  %v342_v2 = vsub.f32 0.0, %v340_v0 }
  0x9d   : > { %v343_v4 = vsub.f32 0.0, %v341_v1  ;;  %v344_v5 = vsel %vm327_vm5, %v342_v2, 0.0 }
  0x9e   : > { %v348_v6 = vand.u32 4294967294, %v344_v5 }
  0x9f   : > { %v345_v8 = vsel %vm328_vm7, %v343_v4, 0.0 }
  0xa0   : > { %v349_v9 = vand.u32 4294967294, %v345_v8  ;;  %v350_v10 = vor.u32 %v348_v6, %v331_v3 }
  0xa2   : > { %v351_v11 = vor.u32 %v349_v9, %v332_v7 }
  0xa4   : > { %v352_v12 = vcombine.low %v350_v10, %v351_v11 }
  0xa6   : > { %354 = vst [vmem:[%s219_s21] sm:$0xff] %v352_v12 }
  0xa7   : > { %654 = shalt.err (!%p651_p2)
}
  0xa8   : > { %s655_s8 = scalar_lea.hbm %s934_s27, 128  ;;  %s659_s4 = scalar_lea.hbm %s983_s2, 256 }
  0xa9   : > { %p656_p9 = scmp.ne.s32.totalorder %s934_s27, %s655_s8  ;;  %p660_p6 = scmp.lt.u32.totalorder %s934_s27, %s983_s2 }
  0xaa   : > { %p661_p13 = scmp.lt.u32.totalorder %s659_s4, %s655_s8  ;;  %p663_p0 = scmp.lt.u32.totalorder %s655_s8, %s934_s27 }
  0xab   : > { %p657_p11 = pnand %p656_p9, %p996_p5 }
  0xac   : > { %p662_p8 = por %p661_p13, %p660_p6 }
  0xad   : > { %p658_p3 = pneg %p657_p11 }
  0xae   : > { %p664_p7 = por %p663_p0, %p662_p8 }
  0xb0   : > { %p665_p4 = pnand %p664_p7, %p658_p3 }
  0xb2   : > { %668 = shalt.err (!%p665_p4)
}
  0xb3   : > { %507 = dma.vmem_to_hbm [thread:$0]  (%p996_p5), %s929_s19, 128, %s934_s27, %s356_s28  }
  0xb4 PF: > { %s383_s29 = sand.u32 1, %s707_s9   ;;  %p997_p10 = scmp.ne.s32.totalorder %s989_s24, 0 }
  0xb5   : > { %p998_p12 = scmp.ge.s32.totalorder %s727_s14, 2  ;;  %s384_s16 = scalar_lea.sflag [#allocation4], %s383_s29 }
  0xb7   : > { %p517_p1 = pnand %p998_p12, %p997_p10 }
  0xb9   : > { %702 = dma.done.wait (!%p517_p1), %s384_s16, 128  }
  0xba   : > { %704 = vsyncadd (!%p517_p1), %s384_s16, 4294967168  ;;  %s21_s14 = sadd.s32 1, %s727_s14   ;;  %s999_s9 = smov %s711_s10 }
  0xbb   : > { %p18_p2 = scmp.ge.s32.totalorder %s21_s14, 4   ;;  %s1000_s10 = smov %s715_s11 }
  0xbc   : > { %s1001_s11 = smov %s807_s23  ;;  %s1002_s12 = smov %s723_s13 }
  0xbd   : > { %s1003_s13 = smov %s1005_s17  ;;  %20 = sbr.rel (!%p18_p2) target bundleno = 8 (0x8), region = 86 }
  0xc4   :  { %389 = vsyncpa [#allocation3], 1 }
  0xc5   :  { %391 = vsyncpa [#allocation3 + $0x1], 1 }
  0xc6   :  { %392 = vsyncpa [#allocation6], 1 }
  0xc7   :  { %394 = vsyncpa [#allocation6 + $0x1], 1 }
  0xc8   :  { %395 = vsyncpa [#allocation4], 1 }
  0xc9   :  { %397 = vsyncpa [#allocation4 + $0x1], 1 }

</bundles_post_ra>
